<compile_context>
chip_gen: v7x
topology: tpu7x:2x2x1
jax: 0.10.0
libtpu: 0.0.40
codegen_flags: <defaults>
</compile_context>

<pallas_src>
import functools

import jax
import jax.numpy as jnp
from jax.experimental import pallas as pl
from jax.experimental.pallas import tpu as pltpu


def _round_up(x, m):
    return ((x + m - 1) // m) * m


def _vmem_budget_bytes():
    """Physical VMEM per TensorCore minus headroom (generation-aware)."""
    try:
        cap = int(pltpu.get_tpu_info().vmem_capacity_bytes)
    except Exception:
        cap = 64 * 1024 * 1024  # conservative (v7x-sized) fallback
    return max(32 * 1024 * 1024, cap - 16 * 1024 * 1024)


# --------------------------------------------------------------------------
# Single-pass kernel: one grid step handles Bt batch rows, full time axis.
# --------------------------------------------------------------------------
def _se_fused_kernel(x_ref, w1t_ref, b1_ref, w2t_ref, b2_ref, o_ref):
    # x_ref/o_ref: (Bt, C, L).  w1t: (C_in, C_se) with 1/L folded in; b1: (1, C_se)
    # w2t: (C_se, C_out); b2: (1, C_out)
    x = x_ref[...]                                            # native dtype (no f32 copy)

    # Squeeze: per (batch, channel) time-sum with f32 accumulation.
    s = jnp.sum(x, axis=-1, dtype=jnp.float32)                # (Bt, C_in)

    # Excitation: two small matmuls over channels (MXU, f32 accumulate).
    h = jnp.dot(s, w1t_ref[...], preferred_element_type=jnp.float32) + b1_ref[...]
    h = jnp.maximum(h, 0.0)                                   # (Bt, C_se)
    g = jnp.dot(h, w2t_ref[...], preferred_element_type=jnp.float32) + b2_ref[...]
    g = jax.nn.sigmoid(g)                                     # (Bt, C_out)

    # Scale: broadcast the per-(batch, channel) gate over time, in native dtype.
    o_ref[...] = (x * g[:, :, None].astype(x.dtype)).astype(o_ref.dtype)


# --------------------------------------------------------------------------
# Two-pass fallback: (1) gate kernel reduces over L tiles, (2) scale kernel.
# --------------------------------------------------------------------------
def _se_gate_kernel(x_ref, w1_ref, b1_ref, w2_ref, b2_ref, g_ref, acc_ref, *, l_total):
    # grid = (B, nL). x_ref: (C_in, tl); g_ref: (C_out, 1); acc_ref: (C_in, 1) f32 scratch.
    l = pl.program_id(1)

    @pl.when(l == 0)
    def _():
        acc_ref[...] = jnp.zeros_like(acc_ref)

    x = x_ref[...]
    tl = x.shape[-1]
    if l_total % tl != 0:
        # Mask the (possibly garbage) out-of-bounds tail of the last time tile.
        col = jax.lax.broadcasted_iota(jnp.int32, x.shape, 1) + l * tl
        x = jnp.where(col < l_total, x, jnp.zeros_like(x))
    acc_ref[...] += jnp.sum(x, axis=-1, keepdims=True, dtype=jnp.float32)

    @pl.when(l == pl.num_programs(1) - 1)
    def _():
        s = acc_ref[...]                                      # (C_in, 1); 1/L folded into w1
        h = jnp.dot(w1_ref[...], s, preferred_element_type=jnp.float32) + b1_ref[...]
        h = jnp.maximum(h, 0.0)                               # (C_se, 1)
        g = jnp.dot(w2_ref[...], h, preferred_element_type=jnp.float32) + b2_ref[...]
        g_ref[...] = jax.nn.sigmoid(g)                        # (C_out, 1), f32


def _se_scale_kernel(g_ref, x_ref, o_ref):
    # grid = (B, nL). g_ref: (C_out, 1) f32; x_ref/o_ref: (C, tl).
    x = x_ref[...]
    o_ref[...] = (x * g_ref[...].astype(x.dtype)).astype(o_ref.dtype)


# --------------------------------------------------------------------------
# Wrapper / dispatcher
# --------------------------------------------------------------------------
def se_block(x, w1, b1, w2, b2, *, force_two_pass=False):
    """x: (B, C_in, L); w1: (C_se, C_in); b1: (C_se,); w2: (C_out, C_se); b2: (C_out,)."""
    B, C_in, L = x.shape
    C_se = w1.shape[0]
    C_out = w2.shape[0]
    assert C_out == C_in, "SEBlock gate must broadcast against x (out_channels == in_channels)"

    itemsize = x.dtype.itemsize
    budget = _vmem_budget_bytes()
    weight_bytes = 4 * (C_in * C_se + C_se + C_se * C_out + C_out)
    slack = 2 * 1024 * 1024
    per_batch_bytes = C_in * L * itemsize
    avail = budget - weight_bytes - slack

    # Largest batch-block that keeps 2x(in) + 2x(out) double-buffered tiles in budget.
    bt_fit = avail // (4 * per_batch_bytes) if per_batch_bytes > 0 else 0
    inv_l = 1.0 / float(L)

    if bt_fit >= 1 and not force_two_pass:
        # ------ single pass: one read + one write of x ------
        # Target >=1 MiB per-step tiles, keep >=2 grid steps when B >= 2 (v7x
        # megacore), and make Bt a divisor of B so all blocks are full.
        bt_cap = int(min(bt_fit, max(1, (1 << 20) // per_batch_bytes), B))
        if B >= 2:
            bt_cap = min(bt_cap, (B + 1) // 2)
        bt = 1
        for cand in range(max(1, bt_cap), 0, -1):
            if B % cand == 0:
                bt = cand
                break

        w1t = (w1.astype(jnp.float32) * inv_l).T              # (C_in, C_se), 1/L folded in
        b1r = b1.astype(jnp.float32).reshape(1, C_se)
        w2t = w2.astype(jnp.float32).T                        # (C_se, C_out)
        b2r = b2.astype(jnp.float32).reshape(1, C_out)

        need = 4 * bt * per_batch_bytes + weight_bytes + slack
        vmem_limit = int(min(budget, max(need, 16 * 1024 * 1024)))

        return pl.pallas_call(
            _se_fused_kernel,
            out_shape=jax.ShapeDtypeStruct((B, C_out, L), x.dtype),
            grid=(B // bt,),
            in_specs=[
                pl.BlockSpec((bt, C_in, L), lambda i: (i, 0, 0)),   # x tile (full L)
                pl.BlockSpec((C_in, C_se), lambda i: (0, 0)),       # w1^T (resident)
                pl.BlockSpec((1, C_se), lambda i: (0, 0)),          # b1
                pl.BlockSpec((C_se, C_out), lambda i: (0, 0)),      # w2^T
                pl.BlockSpec((1, C_out), lambda i: (0, 0)),         # b2
            ],
            out_specs=pl.BlockSpec((bt, C_out, L), lambda i: (i, 0, 0)),
            compiler_params=pltpu.CompilerParams(
                dimension_semantics=("parallel",),
                vmem_limit_bytes=vmem_limit,
            ),
        )(x, w1t, b1r, w2t, b2r)

    # ------ two-pass fallback: gate over L tiles, then scale ------
    tl_fit = avail // (4 * C_in * itemsize) if C_in > 0 else 128
    tl = max(128, min(_round_up(L, 128), (int(tl_fit) // 128) * 128))
    n_l = pl.cdiv(L, tl)

    w1s = w1.astype(jnp.float32) * inv_l                      # (C_se, C_in), 1/L folded in
    b1c = b1.astype(jnp.float32).reshape(C_se, 1)
    w2c = w2.astype(jnp.float32)                              # (C_out, C_se)
    b2c = b2.astype(jnp.float32).reshape(C_out, 1)

    vmem_limit = int(min(budget, max(4 * C_in * tl * itemsize + weight_bytes + slack,
                                     16 * 1024 * 1024)))

    gates = pl.pallas_call(
        functools.partial(_se_gate_kernel, l_total=L),
        out_shape=jax.ShapeDtypeStruct((B, C_out, 1), jnp.float32),
        grid=(B, n_l),
        in_specs=[
            pl.BlockSpec((None, C_in, tl), lambda b, l: (b, 0, l)),
            pl.BlockSpec((C_se, C_in), lambda b, l: (0, 0)),
            pl.BlockSpec((C_se, 1), lambda b, l: (0, 0)),
            pl.BlockSpec((C_out, C_se), lambda b, l: (0, 0)),
            pl.BlockSpec((C_out, 1), lambda b, l: (0, 0)),
        ],
        out_specs=pl.BlockSpec((None, C_out, 1), lambda b, l: (b, 0, 0)),
        scratch_shapes=[pltpu.VMEM((C_in, 1), jnp.float32)],
        compiler_params=pltpu.CompilerParams(
            dimension_semantics=("parallel", "arbitrary"),
            vmem_limit_bytes=vmem_limit,
        ),
    )(x, w1s, b1c, w2c, b2c)

    return pl.pallas_call(
        _se_scale_kernel,
        out_shape=jax.ShapeDtypeStruct((B, C_out, L), x.dtype),
        grid=(B, n_l),
        in_specs=[
            pl.BlockSpec((None, C_out, 1), lambda b, l: (b, 0, 0)),
            pl.BlockSpec((None, C_in, tl), lambda b, l: (b, 0, l)),
        ],
        out_specs=pl.BlockSpec((None, C_out, tl), lambda b, l: (b, 0, l)),
        compiler_params=pltpu.CompilerParams(
            dimension_semantics=("parallel", "parallel"),
            vmem_limit_bytes=vmem_limit,
        ),
    )(gates, x)


def se_block_ref(x, w1, b1, w2, b2):
    """Pure-JAX reference matching the PyTorch forward (lengths=None)."""
    s = jnp.mean(x, axis=2)                                   # (B, C_in)
    s = jnp.maximum(s @ w1.T + b1, 0.0)                       # (B, C_se)
    s = jax.nn.sigmoid(s @ w2.T + b2)                         # (B, C_out)
    return s[:, :, None] * x


if __name__ == "__main__":
    # Small, forward-consistent shapes; L=32 exercises the non-128-aligned
    # (masked tail store) path in both the single-pass and two-pass kernels.
    B, C_in, C_se, C_out, L = 2, 16, 8, 16, 32

    key = jax.random.PRNGKey(0)
    kx, kw1, kb1, kw2, kb2 = jax.random.split(key, 5)

    x = jax.random.normal(kx, (B, C_in, L), dtype=jnp.float32)

    # Deterministic synthetic parameters (Conv1d kernel_size=1 -> dense weights).
    w1 = 0.1 * jax.random.normal(kw1, (C_se, C_in), dtype=jnp.float32)
    b1 = 0.1 * jax.random.normal(kb1, (C_se,), dtype=jnp.float32)
    w2 = 0.1 * jax.random.normal(kw2, (C_out, C_se), dtype=jnp.float32)
    b2 = 0.1 * jax.random.normal(kb2, (C_out,), dtype=jnp.float32)

    ref = se_block_ref(x, w1, b1, w2, b2)

    # Primary (single-pass) path.
    out = jax.block_until_ready(se_block(x, w1, b1, w2, b2))
    assert out.shape == (B, C_out, L)
    assert jnp.allclose(out, ref, atol=1e-5, rtol=1e-5), "single-pass mismatch vs reference"

    # Two-pass fallback path (used automatically when C*L tiles exceed VMEM budget).
    out2 = jax.block_until_ready(se_block(x, w1, b1, w2, b2, force_two_pass=True))
    assert jnp.allclose(out2, ref, atol=1e-5, rtol=1e-5), "two-pass mismatch vs reference"

    print("KERNEL_OK")
</pallas_src>

<mosaic_0001>
module attributes {stable_mosaic.version = 11 : i64} {
  func.func @_se_fused_kernel(%arg0: i32, %arg1: memref<1x16x32xf32, #tpu.memory_space<vmem>>, %arg2: memref<16x8xf32, #tpu.memory_space<vmem>>, %arg3: memref<1x8xf32, #tpu.memory_space<vmem>>, %arg4: memref<8x16xf32, #tpu.memory_space<vmem>>, %arg5: memref<1x16xf32, #tpu.memory_space<vmem>>, %arg6: memref<1x16x32xf32, #tpu.memory_space<vmem>>) attributes {dimension_semantics = [#tpu.dimension_semantics<parallel>], iteration_bounds = array<i64: 2>, scalar_prefetch = 0 : i64, scratch_operands = 0 : i64, tpu.core_type = #tpu.core_type<tc>, window_params = [{transform_indices = @transform_0, window_bounds = array<i64: 1, 16, 32>}, {pipeline_mode = #tpu.pipeline_mode<synchronous>, transform_indices = @transform_1, window_bounds = array<i64: 16, 8>}, {pipeline_mode = #tpu.pipeline_mode<synchronous>, transform_indices = @transform_2, window_bounds = array<i64: 1, 8>}, {pipeline_mode = #tpu.pipeline_mode<synchronous>, transform_indices = @transform_3, window_bounds = array<i64: 8, 16>}, {pipeline_mode = #tpu.pipeline_mode<synchronous>, transform_indices = @transform_4, window_bounds = array<i64: 1, 16>}, {transform_indices = @transform_5, window_bounds = array<i64: 1, 16, 32>}]} {
    %c0 = arith.constant 0 : index
    %c0_0 = arith.constant 0 : index
    %c0_1 = arith.constant 0 : index
    %0 = vector.load %arg1[%c0, %c0_0, %c0_1] : memref<1x16x32xf32, #tpu.memory_space<vmem>>, vector<1x16x32xf32>
    %cst = arith.constant dense<0.000000e+00> : vector<1x16xf32>
    %1 = vector.multi_reduction <add>, %0, %cst [2] : vector<1x16x32xf32> to vector<1x16xf32>
    %c0_2 = arith.constant 0 : index
    %c0_3 = arith.constant 0 : index
    %2 = vector.load %arg2[%c0_2, %c0_3] : memref<16x8xf32, #tpu.memory_space<vmem>>, vector<16x8xf32>
    %cst_4 = arith.constant dense<0.000000e+00> : vector<1x8xf32>
    %3 = tpu.matmul %1, %2, %cst_4 {dimension_numbers = #tpu.dot_dimension_numbers<[1], [0], [0], [1], [0, 0, 1, 1], [], []>} : vector<1x16xf32>, vector<16x8xf32>, vector<1x8xf32> -> vector<1x8xf32>
    %c0_5 = arith.constant 0 : index
    %c0_6 = arith.constant 0 : index
    %4 = vector.load %arg3[%c0_5, %c0_6] : memref<1x8xf32, #tpu.memory_space<vmem>>, vector<1x8xf32>
    %5 = arith.addf %3, %4 : vector<1x8xf32>
    %cst_7 = arith.constant 0.000000e+00 : f32
    %6 = vector.broadcast %cst_7 : f32 to vector<1x8xf32>
    %7 = arith.maximumf %5, %6 : vector<1x8xf32>
    %c0_8 = arith.constant 0 : index
    %c0_9 = arith.constant 0 : index
    %8 = vector.load %arg4[%c0_8, %c0_9] : memref<8x16xf32, #tpu.memory_space<vmem>>, vector<8x16xf32>
    %cst_10 = arith.constant dense<0.000000e+00> : vector<1x16xf32>
    %9 = tpu.matmul %7, %8, %cst_10 {dimension_numbers = #tpu.dot_dimension_numbers<[1], [0], [0], [1], [0, 0, 1, 1], [], []>} : vector<1x8xf32>, vector<8x16xf32>, vector<1x16xf32> -> vector<1x16xf32>
    %c0_11 = arith.constant 0 : index
    %c0_12 = arith.constant 0 : index
    %10 = vector.load %arg5[%c0_11, %c0_12] : memref<1x16xf32, #tpu.memory_space<vmem>>, vector<1x16xf32>
    %11 = arith.addf %9, %10 : vector<1x16xf32>
    %12 = arith.negf %11 : vector<1x16xf32>
    %13 = math.exp %12 : vector<1x16xf32>
    %cst_13 = arith.constant 1.000000e+00 : f32
    %14 = vector.broadcast %cst_13 : f32 to vector<1x16xf32>
    %15 = arith.addf %14, %13 : vector<1x16xf32>
    %16 = arith.divf %14, %15 : vector<1x16xf32>
    %17 = vector.shape_cast %16 : vector<1x16xf32> to vector<1x16x1xf32>
    %18 = vector.broadcast %17 : vector<1x16x1xf32> to vector<1x16x32xf32>
    %19 = arith.mulf %0, %18 : vector<1x16x32xf32>
    %c0_14 = arith.constant 0 : index
    %c0_15 = arith.constant 0 : index
    %c0_16 = arith.constant 0 : index
    %20 = vector.load %arg6[%c0_14, %c0_15, %c0_16] : memref<1x16x32xf32, #tpu.memory_space<vmem>>, vector<1x16x32xf32>
    tpu.vector_store %arg6[%c0_14, %c0_15, %c0_16], %19 {strides = array<i32>} : memref<1x16x32xf32, #tpu.memory_space<vmem>>, vector<1x16x32xf32>,
    return
  }
  func.func @transform_0(%arg0: i32) -> (i32, i32, i32) {
    %c0_i32 = arith.constant 0 : i32
    %c0_i32_0 = arith.constant 0 : i32
    %c0_i32_1 = arith.constant 0 : i32
    return %arg0, %c0_i32, %c0_i32_0 : i32, i32, i32
  }
  func.func @transform_1(%arg0: i32) -> (i32, i32) {
    %c0_i32 = arith.constant 0 : i32
    %c0_i32_0 = arith.constant 0 : i32
    %c0_i32_1 = arith.constant 0 : i32
    return %c0_i32, %c0_i32_0 : i32, i32
  }
  func.func @transform_2(%arg0: i32) -> (i32, i32) {
    %c0_i32 = arith.constant 0 : i32
    %c0_i32_0 = arith.constant 0 : i32
    %c0_i32_1 = arith.constant 0 : i32
    return %c0_i32, %c0_i32_0 : i32, i32
  }
  func.func @transform_3(%arg0: i32) -> (i32, i32) {
    %c0_i32 = arith.constant 0 : i32
    %c0_i32_0 = arith.constant 0 : i32
    %c0_i32_1 = arith.constant 0 : i32
    return %c0_i32, %c0_i32_0 : i32, i32
  }
  func.func @transform_4(%arg0: i32) -> (i32, i32) {
    %c0_i32 = arith.constant 0 : i32
    %c0_i32_0 = arith.constant 0 : i32
    %c0_i32_1 = arith.constant 0 : i32
    return %c0_i32, %c0_i32_0 : i32, i32
  }
  func.func @transform_5(%arg0: i32) -> (i32, i32, i32) {
    %c0_i32 = arith.constant 0 : i32
    %c0_i32_0 = arith.constant 0 : i32
    %c0_i32_1 = arith.constant 0 : i32
    return %arg0, %c0_i32, %c0_i32_0 : i32, i32, i32
  }
}

</mosaic_0001>

<bundles_post_ra>
// kernel: tpu_custom_call.1
= control target key start
LH: loop header
LB: loop body
LE: loop exit
PB: predicated region body
PF: predicated region fallthrough
CT: control target
= control target key end

     0   :  { %10 = vsyncpa [#allocation3], 0  ;;  %s946_s0 = inlined_call_operand.hbm [shape: f32[2,16,32], index: 0, kind: input, shape index: {}]   ;;  %s947_s1 = inlined_call_operand.vmem [shape: f32[16,8], index: 1, kind: input, shape index: {}]   ;;  %s948_s2 = inlined_call_operand.vmem [shape: f32[1,8], index: 2, kind: input, shape index: {}]   ;;  %s949_s3 = inlined_call_operand.vmem [shape: f32[8,16], index: 3, kind: input, shape index: {}]   ;;  %s950_s4 = inlined_call_operand.vmem [shape: f32[1,16], index: 4, kind: input, shape index: {}]   ;;  %s951_s5 = inlined_call_operand.hbm [shape: f32[2,16,32], index: 5, kind: output, shape index: {}]  }
   0x1   :  { %12 = vsyncpa [#allocation3 + $0x1], 0 }
   0x2   :  { %13 = vsyncpa [#allocation4], 0 }
   0x3   :  { %15 = vsyncpa [#allocation4 + $0x1], 0  ;;  %s761_s18 = smov 0   ;;  %s763_s19 = smov 0  }
   0x4   :  { %s765_s20 = smov 0   ;;  %s767_s21 = smov 0  }
   0x5 LB: > { %s782_s22 = sadd.s32 4294967295, %s720_s21   ;;  %s528_s23 = sadd.s32 4294967294, %s720_s21   ;;  %s720_s21 = sphi %s767_s21, %s964_s21   ;;  %s716_s20 = sphi %s765_s20, %s963_s20   ;;  %s712_s19 = sphi %s763_s19, %s962_s19   ;;  %s708_s18 = sphi %s761_s18, %s961_s18  }
   0x6   : > { %s786_s24 = sadd.s32 1, %s720_s21   ;;  %s28_s25 = sadd.s32 1, %s716_s20 }
   0x7   : > { %s25_s26 = ssub.s32 %s720_s21, %s786_s24  ;;  %p35_p0 = scmp.ne.s32.totalorder %s716_s20, %s712_s19 }
   0x8   : > { %p26_p1 = scmp.eq.s32.totalorder %s25_s26, 0  ;;  %p36_p2 = scmp.eq.s32.totalorder %s720_s21, 0 }
   0x9   : > { %p41_p3 = scmp.ne.s32.totalorder %s712_s19, %s708_s18  ;;  %p42_p4 = scmp.eq.s32.totalorder %s782_s22, 0 }
   0xa   : > { %s798_s27 = scalar_select %p26_p1, %s716_s20, %s28_s25  }
   0xb   : > { %p800_p5 = por %p36_p2, %p35_p0  ;;  %p804_p6 = por %p42_p4, %p41_p3 }
   0xc   : > { %p149_p7 = scmp.eq.s32.totalorder %s782_s22, 1  ;;  %p155_p8 = scmp.eq.s32.totalorder %s528_s23, 1 }
   0xd   : > { %p579_p10 = scmp.lt.s32.totalorder %s720_s21, 2  ;;  %s187_s7 = sand.u32 1, %s716_s20  }
   0xe   : > { %p811_p11 = por %p149_p7, %p35_p0  ;;  %p815_p12 = por %p155_p8, %p41_p3 }
   0xf   : > { %s545_s8 = sshll.u32 %s720_s21, 8  ;;  %s531_s9 = sshll.u32 %s187_s7, 4 }
  0x10   : > { %s955_s30 = scalar_select %p811_p11, 1, 0 }
  0x11   : > { %s956_s6 = scalar_select %p815_p12, 1, 0 }
  0x12   : > { %s824_s12 = scalar_lea.hbm %s946_s0, %s545_s8  ;;  %s191_s13 = scalar_lea.vmem [#allocation2], %s531_s9 }
  0x13   : > { %s198_s14 = sshll.u32 %s191_s13, 4  ;;  %p828_p13 = pnand %p579_p10, %p800_p5  ;;  %s832_s14 = int_to_ptr.vmem [resolvable:$true] %s198_s14 }
  0x14   : > { %s834_s16 = scalar_lea.sflag [#allocation3], %s187_s7  ;;  %s624_s17 = scalar_lea.hbm %s824_s12, 256 }
  0x15   : > { %p625_p0 = scmp.ne.s32.totalorder %s824_s12, %s624_s17  ;;  %p626_p1 = pneg %p828_p13 }
  0x16   : > { %s629_s26 = scalar_lea.hbm %s946_s0, 512  ;;  %p630_p4 = scmp.lt.u32.totalorder %s824_s12, %s946_s0 }
  0x17   : > { %p627_p2 = pnand %p626_p1, %p625_p0  ;;  %p631_p5 = scmp.lt.u32.totalorder %s629_s26, %s624_s17 }
  0x18   : > { %p633_p8 = scmp.lt.u32.totalorder %s624_s17, %s824_s12 }
  0x19   : > { %p628_p3 = pneg %p627_p2  ;;  %p632_p7 = por %p631_p5, %p630_p4 }
  0x1b   : > { %p634_p10 = por %p633_p8, %p632_p7 }
  0x1d   : > { %p635_p9 = pnand %p634_p10, %p628_p3 }
  0x1f   : > { %638 = shalt.err (!%p635_p9)
}
  0x20   : > { %s639_s7 = scalar_lea.vmem %s832_s14, 256  ;;  %s722_s9 = smov [#allocation2]  }
  0x21   : > { %p640_p0 = scmp.ne.s32.totalorder %s832_s14, %s639_s7  ;;  %s644_s10 = sshll.u32 %s722_s9, 4  ;;  %s645_s10 = int_to_ptr.vmem [resolvable:$false] %s644_s10 }
  0x22   : > { %s646_s11 = scalar_lea.vmem %s645_s10, 512  ;;  %p647_p11 = scmp.lt.s32.totalorder %s832_s14, %s645_s10 }
  0x23   : > { %p642_p2 = pnand %p640_p0, %p626_p1  ;;  %p648_p4 = scmp.lt.s32.totalorder %s646_s11, %s639_s7 }
  0x25   : > { %p643_p12 = pneg %p642_p2  ;;  %p649_p5 = por %p648_p4, %p647_p11 }
  0x27   : > { %p650_p7 = pnand %p649_p5, %p643_p12 }
  0x29   : > { %653 = shalt.err (!%p650_p7)
}
  0x2a   : > { %s723_s13 = smov 128   ;;  %s724_s17 = smov 8  }
  0x2b   : > { %574 = dma.hbm_to_vmem [thread:$0]  (!%p828_p13), %s824_s12, 256, %s832_s14, %s834_s16, %s723_s13, %s723_s13, %s724_s17  }
  0x2c   : > { %p534_p9 = scmp.ge.s32.totalorder %s720_s21, 1  ;;  %p206_p1 = scmp.lt.s32.totalorder %s720_s21, 3 }
  0x2e   : > { %p207_p3 = pnand %p534_p9, %p206_p1 }
  0x2f   : > { %s865_s23 = sand.u32 (!%p207_p3), 1, %s712_s19  }
  0x30   : > { %210 = sbr.rel (%p207_p3) target bundleno = 801 (0x321), region = 40  ;;  %s535_s25 = sshll.u32 (!%p207_p3), %s865_s23, 4 }
  0x31   : > { %s213_s26 = scalar_lea.sflag (!%p207_p3), [#allocation3], %s865_s23  ;;  %s216_s28 = scalar_lea.vmem (!%p207_p3), [#allocation2], %s535_s25 }
  0x37   : > { %699 = dma.done.wait (%p804_p6), %s213_s26, 256  }
  0x38   : > { %701 = vsyncadd (%p804_p6), %s213_s26, 4294967040  ;;  %vm245_vm0 = vcmask 261120   ;;  %v243_v0 = vld [vmem:[%s216_s28] sm:$0xff]  ;;  %v244_v1 = vld [vmem:[%s216_s28 + $0x8] sm:$0xff]  ;;  %v725_v4 = vmov 0.0|0.0   ;;  %vm726_vm1 = vmmov 0   ;;  %v257_v9 = vlaneseq }
  0x39   : > { %v246_v2 = vsel %vm245_vm0, %v243_v0, 0.0  ;;  %v249_v3 = vsel %vm245_vm0, %v244_v1, 0.0  ;;  %564 = vmatprep.subr.bf16.mxu0 %v725_v4  ;;  %v252_v5 = vld [vmem:[%s947_s1] sm:$0xff]  ;;  %v253_v6 = vld [vmem:[%s947_s1 + $0x8] sm:$0xff]  ;;  %v727_v8 = vmov 0.0   ;;  %vm268_vm2 = vcmask 130112  }
  0x3a   : > { %247 = vadd.xlane.f32.xlu0 %v246_v2  ;;  %v565_v7 = vpack.c.bf16 %v253_v6, %v252_v5  ;;  %556 = vmatprep.mubr.msk.f32.mxu0 %vm726_vm1, %v727_v8  ;;  %v258_v10 = vand.u32 127, %v257_v9  ;;  %v260_v11 = vshrl.u32 %v257_v9, 7  ;;  %vm270_vm3 = vcmask 130048   ;;  %v344_v20 = vld [vmem:[%s949_s3] sm:$0xff]  ;;  %s242_s13 = scalar_lea.vmem [#allocation5], %s535_s25  ;;  %s546_s26 = sshll.u32 %s782_s22, 8 }
  0x3b   : > { %559 = vmatprep.subr.mxu1 %v727_v8  ;;  %561 = vmatprep.mubr.msk.f32.mxu1 %vm726_vm1, %v727_v8  ;;  %v254_v21 = vld [vmem:[%s948_s2] sm:$0x1]  ;;  %vm346_vm4 = vcmask 64512   ;;  %s455_s17 = sshll.u32 %s242_s13, 4  ;;  %s901_s14 = scalar_lea.hbm %s951_s5, %s546_s26  ;;  %s895_s17 = int_to_ptr.vmem [resolvable:$true] %s455_s17 }
  0x3c   : > { %566 = vmatpush3.bf16.msra.mxu0 %v565_v7  ;;  %v263_v12 = vadd.s32 4294967288, %v258_v10  ;;  %v261_v14 = vsub.s32 %v258_v10, %v260_v11  ;;  %560 = vmatpush3.msra.mxu1 %v344_v20  ;;  %v345_v26 = vld [vmem:[%s950_s4] sm:$0x1]  ;;  %v428_v33 = vsub.s32 0, %v260_v11  ;;  %s442_s25 = scalar_lea.sflag [#allocation4], %s865_s23  ;;  %s654_s15 = scalar_lea.vmem %s895_s17, 256 }
  0x3d   : > { %p655_p6 = scmp.ne.s32.totalorder %s895_s17, %s654_s15  ;;  %p958_p11 = scmp.ne.s32.totalorder %s955_s30, 0 }
  0x3e   : > { %250 = vadd.xlane.f32.xlu0 %v249_v3  ;;  %v266_v15 = vsub.s32 %v263_v12, %v260_v11  ;;  %s728_s22 = smov [#allocation5]  }
  0x3f   : > { %p656_p12 = pnand %p655_p6, %p958_p11  ;;  %s658_s16 = sshll.u32 %s728_s22, 4  ;;  %s659_s16 = int_to_ptr.vmem [resolvable:$false] %s658_s16 }
  0x40   : > { %s660_s29 = scalar_lea.vmem %s659_s16, 512  ;;  %p661_p8 = scmp.lt.s32.totalorder %s895_s17, %s659_s16 }
  0x41   : > { %p657_p13 = pneg %p656_p12  ;;  %p662_p10 = scmp.lt.s32.totalorder %s660_s29, %s654_s15 }
  0x43   : > { %p663_p0 = por %p662_p10, %p661_p8 }
  0x45   : > { %p664_p2 = pnand %p663_p0, %p657_p13 }
  0xc7   : > { %v248_v13 = vpop.xlane.xlu0 %247 }
  0xc8   : > { %v262_v17 = vrot.slane %v248_v13, %v261_v14 }
  0xcb   : > { %v251_v16 = vpop.xlane.xlu0 %250 }
  0xcc   : > { %v267_v18 = vrot.slane %v251_v16, %v266_v15 }
  0xce   : > { %v269_v19 = vsel %vm268_vm2, %v267_v18, %v262_v17 }
  0xcf   : > { %557 = vmatmul.mubr.msk.f32.vlgmr.msra.gmra.mrb[0].mxu0 %vm270_vm3, %v269_v19 }
 0x1a2   : > { %v339_v22 = vpop.f32.mrb[0].mxu0 }
 0x1a3   : > { %v340_v23 = vadd.f32 %v339_v22, %v254_v21  ;;  %v558_v24 = vpop.f32.mrb[1].mxu0 }
 0x1a5   : > { %v343_v25 = vmax.f32 %v340_v23, 0.0 }
 0x1a7   : > { %562 = vmatmul.mubr.msk.f32.vlgmr.msra.gmra.mrb[0].mxu1 %vm346_vm4, %v343_v25 }
 0x27a   : > { %v416_v27 = vpop.f32.mrb[0].mxu1 }
 0x27b   : > { %v417_v28 = vadd.f32 %v416_v27, %v345_v26  ;;  %v563_v29 = vpop.f32.mrb[1].mxu1 }
 0x27d   : > { %v539_v30 = vmul.f32 -1.442695, %v417_v28 }
 0x27f   : > { %620 = vpow2.f32 %v539_v30 }
 0x289   : > { %v621_v31 = vpop.eup %620 }
 0x28a   : > { %v423_v32 = vadd.f32 1.0, %v621_v31 }
 0x28c   : > { %622 = vrcp.f32 %v423_v32 }
 0x296   : > { %v623_v34 = vpop.eup %622 }
 0x297   : > { %v429_v35 = vrot.slane %v623_v34, %v428_v33 }
 0x299   : > { %431 = vbcast.lane.b32.xlu1 %v429_v35, 256 }
 0x29d   : > { %435 = vbcast.lane.b32.xlu1 %v429_v35, 264 }
 0x30b   : > { %v432_v36 = vpop.permute.xlu1 %431 }
 0x30c   : > { %v437_v37 = vmul.f32 %v432_v36, %v243_v0 }
 0x30e   : > { %439 = vst.msk [vmem:[%s242_s13] sm:$0xff] %vm245_vm0, %v437_v37 }
 0x30f   : > { %v436_v38 = vpop.permute.xlu1 %435 }
 0x310   : > { %v438_v39 = vmul.f32 %v436_v38, %v244_v1 }
 0x312   : > { %440 = vst.msk [vmem:[%s242_s13 + $0x8] sm:$0xff] %vm245_vm0, %v438_v39 }
 0x313   : > { %667 = shalt.err (!%p664_p2)
}
 0x314   : > { %s668_s8 = scalar_lea.hbm %s901_s14, 256  ;;  %s672_s10 = scalar_lea.hbm %s951_s5, 512 }
 0x315   : > { %p669_p4 = scmp.ne.s32.totalorder %s901_s14, %s668_s8  ;;  %p673_p9 = scmp.lt.u32.totalorder %s901_s14, %s951_s5 }
 0x316   : > { %p674_p1 = scmp.lt.u32.totalorder %s672_s10, %s668_s8  ;;  %p676_p6 = scmp.lt.u32.totalorder %s668_s8, %s901_s14 }
 0x317   : > { %p670_p5 = pnand %p669_p4, %p958_p11 }
 0x318   : > { %p675_p3 = por %p674_p1, %p673_p9 }
 0x319   : > { %p671_p7 = pneg %p670_p5 }
 0x31a   : > { %p677_p12 = por %p676_p6, %p675_p3 }
 0x31c   : > { %p678_p13 = pnand %p677_p12, %p671_p7 }
 0x31e   : > { %681 = shalt.err (!%p678_p13)
}
 0x31f   : > { %s729_s26 = smov 128   ;;  %s730_s28 = smov 8  }
 0x320   : > { %569 = dma.vmem_to_hbm [thread:$0]  (%p958_p11), %s895_s17, 256, %s901_s14, %s442_s25, %s729_s26, %s729_s26, %s730_s28  }
 0x321 PF: > { %s470_s12 = sand.u32 1, %s708_s18   ;;  %p959_p8 = scmp.ne.s32.totalorder %s956_s6, 0 }
 0x322   : > { %p960_p10 = scmp.ge.s32.totalorder %s720_s21, 2  ;;  %s471_s15 = scalar_lea.sflag [#allocation4], %s470_s12 }
 0x324   : > { %p576_p0 = pnand %p960_p10, %p959_p8 }
 0x326   : > { %703 = dma.done.wait (!%p576_p0), %s471_s15, 256  }
 0x327   : > { %705 = vsyncadd (!%p576_p0), %s471_s15, 4294967040  ;;  %p18_p2 = scmp.ge.s32.totalorder %s786_s24, 4   ;;  %s961_s18 = smov %s712_s19 }
 0x328   : > { %s962_s19 = smov %s716_s20  ;;  %s963_s20 = smov %s798_s27 }
 0x329   : > { %s964_s21 = smov %s786_s24  ;;  %20 = sbr.rel (!%p18_p2) target bundleno = 5 (0x5), region = 85 }
 0x330   :  { %476 = vsyncpa [#allocation3], 1 }
 0x331   :  { %478 = vsyncpa [#allocation3 + $0x1], 1 }
 0x332   :  { %479 = vsyncpa [#allocation4], 1 }
 0x333   :  { %481 = vsyncpa [#allocation4 + $0x1], 1 }

</bundles_post_ra>
